<compile_context>
chip_gen: v5e
topology: v5e:2x2
jax: 0.10.0
libtpu: 0.0.40
codegen_flags: <defaults>
</compile_context>

<pallas_src>
import math
from functools import partial

import jax
import jax.numpy as jnp
from jax.experimental import pallas as pl
from jax.experimental.pallas import tpu as pltpu

_VMEM = pl.BlockSpec(memory_space=pltpu.MemorySpace.VMEM)

_BF16_EUP = None


def _use_bf16_eup():
    """bf16 exp/sigmoid only where the EUP/VPU are natively bf16 (v6e / v7x)."""
    global _BF16_EUP
    if _BF16_EUP is None:
        try:
            kind = jax.devices()[0].device_kind.lower()
            _BF16_EUP = ("v6" in kind) or ("v7" in kind)
        except Exception:
            _BF16_EUP = False
    return _BF16_EUP


# --------------------------------------------------------------------------
# Kernel bodies (shared by the standalone and fused pallas_calls)
# --------------------------------------------------------------------------
def _attn_laplacian_body(x_aug, wih_aug, wkq, *, units, bf16_eup):
    """GRU step (h0=0, seq_len=1) + key/query projection + scaled-dot softmax +
    sigmoid + symmetric Laplacian normalization, in transposed orientation
    (features on sublanes, M = N*C on the 128 lanes)."""
    u = units
    f32 = jnp.float32
    # ONE fused matmul: [W_ir; W_iz; W_in; 0] with a bias column, times [x; 1].
    # Row-block 3 yields b_hn broadcast over M (gated by r below).
    gates = jnp.dot(wih_aug, x_aug, preferred_element_type=f32)          # (4U, M)
    r = jax.nn.sigmoid(gates[0:u, :])
    z = jax.nn.sigmoid(gates[u:2 * u, :])
    n = jnp.tanh(gates[2 * u:3 * u, :] + r * gates[3 * u:4 * u, :])
    h_t = (1.0 - z) * n                                                  # (U, M) = GRU outputs^T

    # stacked key/query projection: one (2,U)@(U,M) MXU push/pop
    kq = jnp.dot(wkq, h_t, preferred_element_type=f32)                   # (2, M)
    key_row = kq[0:1, :]                                                 # (1, M)
    query_col = kq[1:2, :].T                                             # (M, 1), one XLU transpose
    inv_sqrt_d = 1.0 / math.sqrt(u)
    scores = (query_col * key_row) * inv_sqrt_d                          # (M, M) outer product
    # Row-max of an outer product: max_j q_i*k_j = q_i*max(k) if q_i>=0 else q_i*min(k).
    kmax = jnp.max(key_row)
    kmin = jnp.min(key_row)
    row_max = jnp.where(query_col >= 0.0, query_col * kmax, query_col * kmin) * inv_sqrt_d
    shifted = scores - row_max
    if bf16_eup:
        # v6e/v7x: both full-tile transcendental passes in bf16; sums / reciprocal /
        # rsqrt stay in f32.
        ex = jnp.exp(shifted.astype(jnp.bfloat16)).astype(f32)
        denom = jnp.sum(ex, axis=-1, keepdims=True)                      # (M, 1)
        p_attn = ex * pl.reciprocal(denom, approx=True)                  # softmax(dim=-1)
        w = jax.nn.sigmoid(p_attn.astype(jnp.bfloat16)).astype(f32)
    else:
        ex = jnp.exp(shifted)
        denom = jnp.sum(ex, axis=-1, keepdims=True)
        p_attn = ex * pl.reciprocal(denom, approx=True)
        w = jax.nn.sigmoid(p_attn)
    # symmetric degree normalization  L = D^-1/2 W D^-1/2
    d2 = jax.lax.rsqrt(jnp.sum(w, axis=1, keepdims=True))                # (M, 1)
    return (d2 * w) * d2.T


def _output_layer_body(x_t, w_glu_aug, w_tail, *, n_nodes, t_out, k_w, c_in):
    """output_layer, lane-major over R = t_out*N.  The temporal GLU conv is one
    matmul over an in-kernel im2col; the residual, both GLU biases, the 1x1 conv and
    the C->1 out conv (+ biases) were folded into w_glu_aug / w_tail at init time."""
    r_cols = t_out * n_nodes
    ones_row = jnp.ones((1, r_cols), jnp.float32)
    # in-kernel im2col: tap k = lanes [k*N, k*N + R) of the (C, T*N) input.
    taps = [x_t[:, k * n_nodes:k * n_nodes + r_cols] for k in range(k_w)]
    patches = jnp.concatenate(taps + [ones_row], axis=0)                 # (C*k_w + 1, R)
    conv = jnp.dot(w_glu_aug, patches, preferred_element_type=jnp.float32)   # (2C, R)
    glu = conv[0:c_in, :] * conv[c_in:2 * c_in, :]                       # (C, R), residual folded
    glu_aug = jnp.concatenate([glu, ones_row], axis=0)                   # (C+1, R)
    # folded (1x1 conv) o (C->1 conv): one (1,C+1)@(C+1,R) matmul, lane-dense output
    return jnp.dot(w_tail, glu_aug, preferred_element_type=jnp.float32)  # (1, R)


# --------------------------------------------------------------------------
# Kernels
# --------------------------------------------------------------------------
def _attn_kernel(x_aug_ref, wih_ref, wkq_ref, l_ref, *, units, bf16_eup):
    l_ref[...] = _attn_laplacian_body(x_aug_ref[...], wih_ref[...], wkq_ref[...],
                                      units=units, bf16_eup=bf16_eup)


def _output_kernel(xt_ref, wglu_ref, wtail_ref, y_ref, *, n_nodes, t_out, k_w, c_in):
    y_ref[...] = _output_layer_body(xt_ref[...], wglu_ref[...], wtail_ref[...],
                                    n_nodes=n_nodes, t_out=t_out, k_w=k_w, c_in=c_in)


def _fused_kernel(x_aug_ref, wih_ref, wkq_ref, xt_ref, wglu_ref, wtail_ref,
                  l_ref, y_ref, *, units, bf16_eup, n_nodes, t_out, k_w, c_in):
    l_ref[...] = _attn_laplacian_body(x_aug_ref[...], wih_ref[...], wkq_ref[...],
                                      units=units, bf16_eup=bf16_eup)
    y_ref[...] = _output_layer_body(xt_ref[...], wglu_ref[...], wtail_ref[...],
                                    n_nodes=n_nodes, t_out=t_out, k_w=k_w, c_in=c_in)


# --------------------------------------------------------------------------
# Wrappers
# --------------------------------------------------------------------------
def _gru_input(x):
    """(B,T,N,C) -> (T+1, N*C): time on sublanes, M=N*C on lanes; the ones row carries
    the folded GRU biases through the fused W_ih matmul."""
    B, T, N, C = x.shape
    x2 = x.reshape(T, N * C).astype(jnp.float32)
    return jnp.concatenate([x2, jnp.ones((1, N * C), jnp.float32)], axis=0)


def _conv_input(x):
    """(B,T,N,C) -> (C, T*N): channels on sublanes, R=(t,n) on lanes (lane-major)."""
    B, T, N, C = x.shape
    return jnp.transpose(x.reshape(T * N, C).astype(jnp.float32))


def attention_laplacian(params, x, units):
    """attention_conv_layer up to (and including) the normalized Laplacian L."""
    B, T, N, C = x.shape
    assert B == 1   # torch squeeze()/diag() path only works with batch == 1
    M = N * C
    return pl.pallas_call(
        partial(_attn_kernel, units=units, bf16_eup=_use_bf16_eup()),
        out_shape=jax.ShapeDtypeStruct((M, M), jnp.float32),
        in_specs=[_VMEM] * 3,
        out_specs=_VMEM,
    )(_gru_input(x), params["gru_w_ih_aug"], params["w_kq"])


def _output_dims(params, x, T_arg):
    B, T, N, C = x.shape
    assert B == 1
    k_w = (params["glu_w_aug"].shape[1] - 1) // C   # GLU conv kernel width (Ko at __init__)
    t_out = T - k_w + 1
    # residual slice length must equal conv output length <=> T_arg == k_w, which also
    # makes the identity fold at tap k_w-1 of glu_w_aug valid.
    assert T - T_arg + 1 == t_out
    return N, C, k_w, t_out


def output_layer(params, x, T_arg):
    B = x.shape[0]
    N, C, k_w, t_out = _output_dims(params, x, T_arg)
    y_row = pl.pallas_call(
        partial(_output_kernel, n_nodes=N, t_out=t_out, k_w=k_w, c_in=C),
        out_shape=jax.ShapeDtypeStruct((1, t_out * N), jnp.float32),
        in_specs=[_VMEM] * 3,
        out_specs=_VMEM,
    )(_conv_input(x), params["glu_w_aug"], params["tail_w"])
    return y_row.reshape(B, t_out, N, 1)


def attention_and_output(params, x, units, T_arg):
    """Single pallas_call producing both L and the output-layer prediction (used when
    both are live: one launch, one staging of x)."""
    B = x.shape[0]
    N, C, k_w, t_out = _output_dims(params, x, T_arg)
    M = N * C
    L, y_row = pl.pallas_call(
        partial(_fused_kernel, units=units, bf16_eup=_use_bf16_eup(),
                n_nodes=N, t_out=t_out, k_w=k_w, c_in=C),
        out_shape=(jax.ShapeDtypeStruct((M, M), jnp.float32),
                   jax.ShapeDtypeStruct((1, t_out * N), jnp.float32)),
        in_specs=[_VMEM] * 6,
        out_specs=(_VMEM, _VMEM),
    )(_gru_input(x), params["gru_w_ih_aug"], params["w_kq"],
      _conv_input(x), params["glu_w_aug"], params["tail_w"])
    return L, y_row.reshape(B, t_out, N, 1)


# --------------------------------------------------------------------------
# forward (jit-compiled by the caller)
# --------------------------------------------------------------------------
def forward(params, x, *, units, blocks, Ks, Kt):
    B, T, N, C = x.shape
    # attention_conv_layer: L via the fused Pallas kernel, eigendecomposition on the
    # XLA path.  stemGNN_block is not provided by the reference source, so e/v are
    # never consumed -> under jit XLA DCEs both the eigh and the attention kernel.
    L = attention_laplacian(params, x, units)
    e, v = jnp.linalg.eigh(L)   # dead under jit; kept for semantic fidelity

    Ko = T
    x_cur, x_back = x, x
    for i, channels in enumerate(blocks):
        # TODO(synk): stemGNN_block class is not provided in the reference source;
        # treated as identity pass-through (e, v, x_back are carried but unused).
        x_cur, x_back = x_cur, x_back
        Ko -= 2 * (Ks - 1)

    y = None
    if Ko > 1:
        y = output_layer(params, x_cur, Ko)
    return y


# --------------------------------------------------------------------------
# deterministic synthetic parameters in pre-folded, MXU-ready layout
# --------------------------------------------------------------------------
def init_params(key, *, units, time_step, blocks, Ks):
    U, T = units, time_step
    C = blocks[1][2]
    k_w = T - 4 * (Ks - 1)            # self.Ko at __init__ == GLU conv kernel width
    ks = jax.random.split(key, 20)

    def uni(k, shape, bound):
        return jax.random.uniform(k, shape, dtype=jnp.float32, minval=-bound, maxval=bound)

    xav = 1.414 * math.sqrt(6.0 / (U + 1))       # xavier_uniform(gain=1.414) on (units, 1)
    gb = 1.0 / math.sqrt(U)
    glu_b = 1.0 / math.sqrt(C * k_w)
    c1b = 1.0 / math.sqrt(C)

    # --- GRU (seq_len == 1, h0 == 0): only W_ih and the biases are live ---
    w_ir, w_iz, w_in = (uni(ks[i], (U, T), gb) for i in range(3))
    b_ir, b_hr, b_iz, b_hz, b_in, b_hn = (uni(ks[3 + i], (U, 1), gb) for i in range(6))
    wih_aug = jnp.concatenate([
        jnp.concatenate([w_ir, b_ir + b_hr], axis=1),
        jnp.concatenate([w_iz, b_iz + b_hz], axis=1),
        jnp.concatenate([w_in, b_in], axis=1),
        jnp.concatenate([jnp.zeros((U, T), jnp.float32), b_hn], axis=1),
    ], axis=0)                                                        # (4U, T+1)

    # --- key/query projections stacked: one (2,U)@(U,M) matmul in-kernel ---
    w_kq = jnp.concatenate([uni(ks[9], (1, U), xav), uni(ks[10], (1, U), xav)], axis=0)

    # --- GLU temporal conv, tap-major (C*k_w + bias col), residual identity folded
    #     into tap k_w-1 of the first half (valid because kt == k_w in this config) ---
    w_glu = uni(ks[11], (2 * C, C * k_w), glu_b)
    b_glu = uni(ks[12], (2 * C, 1), glu_b)
    res = jnp.zeros((2 * C, C * k_w), jnp.float32)
    res = res.at[0:C, (k_w - 1) * C:k_w * C].set(jnp.eye(C, dtype=jnp.float32))
    glu_w_aug = jnp.concatenate([w_glu + res, b_glu], axis=1)          # (2C, C*k_w + 1)

    # --- 1x1 conv (act='sigmoid' branch applies NO sigmoid) and C->1 out conv folded
    #     into one affine map ---
    w_c1 = uni(ks[13], (C, C), c1b)
    b_c1 = uni(ks[14], (1, C), c1b)
    w_o = uni(ks[15], (C, 1), c1b)
    b_o = jnp.zeros((1, 1), jnp.float32)
    w_eff = jnp.dot(w_c1, w_o)                                         # (C, 1)
    b_eff = jnp.dot(b_c1, w_o) + b_o                                   # (1, 1)
    tail_w = jnp.concatenate([w_eff.T, b_eff], axis=1)                 # (1, C+1)

    # NOTE: temporal_conv_layer_InputConv2D and the GRU W_hh matrix are never exercised
    # by this forward (c_in == c_out everywhere; h0 == 0, seq_len == 1).
    return {"gru_w_ih_aug": wih_aug, "w_kq": w_kq,
            "glu_w_aug": glu_w_aug, "tail_w": tail_w}


if __name__ == "__main__":
    # small config consistent with the module's shape algebra
    units, stack_cnt, time_step, predict_window = 32, 2, 12, 3
    blocks = [[8, 16, 8], [8, 16, 8]]
    Ks, Kt = 2, 3
    B, N = 1, 16
    C = blocks[1][2]

    key = jax.random.PRNGKey(0)
    pkey, xkey = jax.random.split(key)
    params = init_params(pkey, units=units, time_step=time_step, blocks=blocks, Ks=Ks)
    x = jax.random.normal(xkey, (B, time_step, N, C), dtype=jnp.float32)

    # full forward: one compiled graph; the dead eigh/attention branch is DCE'd.
    fwd = jax.jit(partial(forward, units=units, blocks=blocks, Ks=Ks, Kt=Kt))
    y = jax.block_until_ready(fwd(params, x))

    # when both results are needed (as here), one fused launch produces L and y
    # from a single staging of x.
    Ko = time_step - len(blocks) * 2 * (Ks - 1)
    fused = jax.jit(lambda p, xx: attention_and_output(p, xx, units=units, T_arg=Ko))
    L, y2 = jax.block_until_ready(fused(params, x))

    t_out = time_step - Ko + 1
    assert y.shape == (B, t_out, N, 1)
    assert L.shape == (N * C, N * C)
    assert bool(jnp.all(jnp.isfinite(y))) and bool(jnp.all(jnp.isfinite(L)))
    assert bool(jnp.allclose(y, y2, rtol=1e-5, atol=1e-5))
    print("KERNEL_OK")
</pallas_src>

<mosaic_0001>
module attributes {stable_mosaic.version = 11 : i64} {
  func.func @_output_kernel(%arg0: memref<8x192xf32, #tpu.memory_space<vmem>>, %arg1: memref<16x65xf32, #tpu.memory_space<vmem>>, %arg2: memref<1x9xf32, #tpu.memory_space<vmem>>, %arg3: memref<1x80xf32, #tpu.memory_space<vmem>>) attributes {dimension_semantics = [], scalar_prefetch = 0 : i64, scratch_operands = 0 : i64, tpu.core_type = #tpu.core_type<tc>} {
    %c0 = arith.constant 0 : index
    %c0_0 = arith.constant 0 : index
    %0 = vector.load %arg0[%c0, %c0_0] : memref<8x192xf32, #tpu.memory_space<vmem>>, vector<8x192xf32>
    %c0_1 = arith.constant 0 : index
    %c0_2 = arith.constant 0 : index
    %1 = vector.load %arg1[%c0_1, %c0_2] : memref<16x65xf32, #tpu.memory_space<vmem>>, vector<16x65xf32>
    %c0_3 = arith.constant 0 : index
    %c0_4 = arith.constant 0 : index
    %2 = vector.load %arg2[%c0_3, %c0_4] : memref<1x9xf32, #tpu.memory_space<vmem>>, vector<1x9xf32>
    %cst = arith.constant 1.000000e+00 : f32
    %3 = vector.broadcast %cst : f32 to vector<1x80xf32>
    %4 = vector.extract_strided_slice %0 {offsets = [0, 0], sizes = [8, 80], strides = [1, 1]} : vector<8x192xf32> to vector<8x80xf32>
    %5 = vector.extract_strided_slice %0 {offsets = [0, 16], sizes = [8, 80], strides = [1, 1]} : vector<8x192xf32> to vector<8x80xf32>
    %6 = vector.extract_strided_slice %0 {offsets = [0, 32], sizes = [8, 80], strides = [1, 1]} : vector<8x192xf32> to vector<8x80xf32>
    %7 = vector.extract_strided_slice %0 {offsets = [0, 48], sizes = [8, 80], strides = [1, 1]} : vector<8x192xf32> to vector<8x80xf32>
    %8 = vector.extract_strided_slice %0 {offsets = [0, 64], sizes = [8, 80], strides = [1, 1]} : vector<8x192xf32> to vector<8x80xf32>
    %9 = vector.extract_strided_slice %0 {offsets = [0, 80], sizes = [8, 80], strides = [1, 1]} : vector<8x192xf32> to vector<8x80xf32>
    %10 = vector.extract_strided_slice %0 {offsets = [0, 96], sizes = [8, 80], strides = [1, 1]} : vector<8x192xf32> to vector<8x80xf32>
    %11 = vector.extract_strided_slice %0 {offsets = [0, 112], sizes = [8, 80], strides = [1, 1]} : vector<8x192xf32> to vector<8x80xf32>
    %12 = tpu.concatenate %4, %5, %6, %7, %8, %9, %10, %11, %3 in 0 : vector<8x80xf32>, vector<8x80xf32>, vector<8x80xf32>, vector<8x80xf32>, vector<8x80xf32>, vector<8x80xf32>, vector<8x80xf32>, vector<8x80xf32>, vector<1x80xf32> -> vector<65x80xf32>
    %cst_5 = arith.constant dense<0.000000e+00> : vector<16x80xf32>
    %13 = tpu.matmul %1, %12, %cst_5 {dimension_numbers = #tpu.dot_dimension_numbers<[1], [0], [0], [1], [0, 0, 1, 1], [], []>} : vector<16x65xf32>, vector<65x80xf32>, vector<16x80xf32> -> vector<16x80xf32>
    %14 = vector.extract_strided_slice %13 {offsets = [0, 0], sizes = [8, 80], strides = [1, 1]} : vector<16x80xf32> to vector<8x80xf32>
    %15 = vector.extract_strided_slice %13 {offsets = [8, 0], sizes = [8, 80], strides = [1, 1]} : vector<16x80xf32> to vector<8x80xf32>
    %16 = arith.mulf %14, %15 : vector<8x80xf32>
    %17 = tpu.concatenate %16, %3 in 0 : vector<8x80xf32>, vector<1x80xf32> -> vector<9x80xf32>
    %cst_6 = arith.constant dense<0.000000e+00> : vector<1x80xf32>
    %18 = tpu.matmul %2, %17, %cst_6 {dimension_numbers = #tpu.dot_dimension_numbers<[1], [0], [0], [1], [0, 0, 1, 1], [], []>} : vector<1x9xf32>, vector<9x80xf32>, vector<1x80xf32> -> vector<1x80xf32>
    %c0_7 = arith.constant 0 : index
    %c0_8 = arith.constant 0 : index
    %19 = vector.load %arg3[%c0_7, %c0_8] : memref<1x80xf32, #tpu.memory_space<vmem>>, vector<1x80xf32>
    tpu.vector_store %arg3[%c0_7, %c0_8], %18 {strides = array<i32>} : memref<1x80xf32, #tpu.memory_space<vmem>>, vector<1x80xf32>,
    return
  }
}

</mosaic_0001>

<bundles_post_ra>
// kernel: forward.1
= control target key start
LH: loop header
LB: loop body
LE: loop exit
PB: predicated region body
PF: predicated region fallthrough
CT: control target
= control target key end

     0   :  { %s165_s16 = smov 80   ;;  %s166_s17 = smov 16   ;;  %vm65_vm0 = vcmask 1040384   ;;  %v172_v3 = vmov 1.0   ;;  %vm55_vm1 = vcmask 130048   ;;  %vm48_vm2 = vcmask 261120   ;;  %s219_s0 = inlined_call_operand.vmem [shape: f32[8,192], index: 0, kind: input, shape index: {}]   ;;  %s220_s1 = inlined_call_operand.vmem [shape: f32[16,65], index: 1, kind: input, shape index: {}]   ;;  %s221_s2 = inlined_call_operand.vmem [shape: f32[1,9], index: 2, kind: input, shape index: {}]   ;;  %s222_s3 = inlined_call_operand.vmem [shape: f32[1,80], index: 3, kind: output, shape index: {}]  }
   0x1   :  { %v196_v0 = vld [vmem:[%s219_s0] sm:$0xff]  ;;  %v15_v1 = vld [vmem:[%s219_s0 + $0x8] sm:$0xff]  ;;  %s167_s18 = smov 48   ;;  %s168_s19 = smov 96   ;;  %123 = vmatpush.msk.msra.mxu0 %vm65_vm0, %v172_v3  ;;  %128 = vmatpush.msk.msra.mxu2 %vm65_vm0, %v172_v3  ;;  %vm41_vm3 = vcmask 392192   ;;  %vm34_vm4 = vcmask 523264  }
   0x2   :  { %v145_v2 = vpack.i.bf16 %v15_v1, %v196_v0  ;;  %26 = vrot.lane.b32.xlu2 %v196_v0, %s165_s16  ;;  %s169_s20 = smov 32   ;;  %s170_s21 = smov 64   ;;  %126 = vmatpush.msk.msra.mxu1 %vm65_vm0, %v172_v3  ;;  %v17_v23 = vld [vmem:[%s220_s1 + $0x8] sm:$0xff]  ;;  %vm58_vm5 = vcmask 531456   ;;  %v16_v24 = vld [vmem:[%s220_s1] sm:$0xff]  ;;  %vm93_vm6 = vcmask 72704  }
   0x3   :  { %s171_s22 = smov 112   ;;  %v18_v28 = vld [vmem:[%s221_s2] sm:$0x1]  ;;  %vm117_vm7 = vcmask 647168  }
   0x4   :  { %146 = vrot.lane.b32.xlu0 %v145_v2, %s166_s17  ;;  %156 = vrot.lane.b32.xlu1 %v145_v2, %s167_s18 }
   0xa   :  { %23 = vrot.lane.b32.xlu2 %v196_v0, %s168_s19 }
   0xc   :  { %151 = vrot.lane.b32.xlu0 %v145_v2, %s169_s20  ;;  %161 = vrot.lane.b32.xlu1 %v145_v2, %s170_s21 }
  0x14   :  { %20 = vrot.lane.b32.xlu0 %v196_v0, %s171_s22 }
  0x5c   :  { %v27_v9 = vpop.permute.xlu2 %26 }
  0x64   :  { %v24_v21 = vpop.permute.xlu2 %23 }
  0x76   :  { %v147_v4 = vpop.permute.xlu0 %146  ;;  %v157_v5 = vpop.permute.xlu1 %156 }
  0x77   :  { %v149_v6 = vunpack.i.h.bf16 %v147_v4  ;;  %v148_v7 = vunpack.i.l.bf16 %v147_v4  ;;  %v159_v10 = vunpack.i.h.bf16 %v157_v5  ;;  %v158_v11 = vunpack.i.l.bf16 %v157_v5 }
  0x79   :  { %v56_v8 = vsel %vm55_vm1, %v148_v7, %v149_v6  ;;  %v42_v19 = vsel %vm41_vm3, %v158_v11, %v159_v10 }
  0x7a   :  { %77 = vmatpush.msra.mxu0 %v56_v8  ;;  %129 = vmatpush.msra.mxu2 %v56_v8 }
  0x7e   :  { %v152_v12 = vpop.permute.xlu0 %151  ;;  %v162_v13 = vpop.permute.xlu1 %161 }
  0x7f   :  { %v154_v14 = vunpack.i.h.bf16 %v152_v12  ;;  %v153_v15 = vunpack.i.l.bf16 %v152_v12  ;;  %v164_v16 = vunpack.i.h.bf16 %v162_v13  ;;  %v163_v17 = vunpack.i.l.bf16 %v162_v13 }
  0x81   :  { %v49_v18 = vsel %vm48_vm2, %v153_v15, %v154_v14  ;;  %v35_v20 = vsel %vm34_vm4, %v163_v17, %v164_v16 }
  0x82   :  { %78 = vmatpush.msra.mxu0 %v49_v18  ;;  %130 = vmatpush.msra.mxu2 %v49_v18 }
  0x84   :  { %79 = vmatpush.msra.mxu0 %v42_v19  ;;  %131 = vmatpush.msra.mxu2 %v42_v19 }
  0x86   :  { %80 = vmatpush.msra.mxu0 %v35_v20  ;;  %132 = vmatpush.msra.mxu2 %v35_v20  ;;  %v21_v22 = vpop.permute.xlu0 %20 }
  0x88   :  { %81 = vmatpush.msra.mxu0 %v27_v9  ;;  %133 = vmatpush.msra.mxu2 %v27_v9 }
  0x8a   :  { %82 = vmatpush.msra.mxu0 %v24_v21  ;;  %134 = vmatpush.msra.mxu2 %v24_v21 }
  0x8c   :  { %83 = vmatpush.msra.mxu0 %v21_v22  ;;  %135 = vmatpush.msra.mxu2 %v21_v22 }
  0x8e   :  { %136 = vmatpush.msra.mxu2 %v196_v0  ;;  %84 = vmatpush.msra.mxu0 %v196_v0 }
  0x8f   :  { %125 = vmatmul.msk.f32.vlgmr.msra.gmra.mxu2 %vm58_vm5, %v17_v23  ;;  %124 = vmatmul.msk.f32.vlgmr.msra.gmra.mxu0 %vm58_vm5, %v16_v24 }
 0x10c   :  { %v86_v25 = vpop.f32.mrf.mxu0 }
 0x112   :  { %v89_v26 = vpop.f32.mrf.mxu2 }
 0x113   :  { %v92_v27 = vmul.f32 %v89_v26, %v86_v25 }
 0x115   :  { %112 = vmatpush.msra.mxu1 %v92_v27 }
 0x116   :  { %127 = vmatmul.msk.f32.vlgmr.msra.gmra.mxu1 %vm93_vm6, %v18_v28 }
 0x193   :  { %v114_v29 = vpop.f32.mrf.mxu1 }
 0x194   :  { %118 = vst.msk [vmem:[%s222_s3] sm:$0x1] %vm117_vm7, %v114_v29 }

</bundles_post_ra>
